<compile_context>
chip_gen: v7x
topology: tpu7x:2x2x1
jax: 0.10.0
libtpu: 0.0.40
codegen_flags: <defaults>
</compile_context>

<pallas_src>
import jax
import jax.numpy as jnp
from jax.experimental import pallas as pl
from jax.experimental.pallas import tpu as pltpu


_LANE = 128
_TARGET_TILE_BYTES = 4 << 20          # ~4 MiB per (batch_tile, W) tile
_MAX_LANE_PAD_FRAC = 0.125            # only pad W->128k if extra traffic <= 12.5%


def _round_up(x, m):
    return ((x + m - 1) // m) * m


def sigmoid_fold_kernel(scal_ref, x_ref, n_ref, o_ref):
    """One (BT, W) tile of the soft fold.

    scal_ref : SMEM (3,) = [crease, n_dot_n, 1/n_dot_n]   (precomputed)
    x_ref    : VMEM (BT, W) input tile
    n_ref    : VMEM (1, W) normal vector (constant index_map -> stays resident)
    o_ref    : VMEM (BT, W) output tile
    """
    x = x_ref[...].astype(jnp.float32)            # (BT, W)
    n = n_ref[...].astype(jnp.float32)            # (1, W)

    crease = scal_ref[0]
    n_dot_n = scal_ref[1]
    inv_n_dot_n = scal_ref[2]

    # Lane reduce on the XLU; kept as a reduce on purpose (kernel is HBM-bound,
    # a thin N=1 MXU matmul would be a pessimization).
    z_dot_x = jnp.sum(x * n, axis=-1, keepdims=True)          # (BT, 1)

    scales = z_dot_x * inv_n_dot_n                             # (BT, 1)
    p = crease * (z_dot_x - n_dot_n)                           # (BT, 1)

    # Stable sigmoid: one EUP exp, one narrow divide, no inf intermediates.
    e = jnp.exp(-jnp.abs(p))
    sig = jnp.where(p >= 0, 1.0, e) / (1.0 + e)                # (BT, 1)

    # Fuse the narrow factors, then a single full-width FMA:
    #   out = x + (2*sigmoid*(1 - scales)) * n
    coef = 2.0 * sig * (1.0 - scales)                          # (BT, 1)
    o_ref[...] = (x + coef * n).astype(o_ref.dtype)


def sigmoid_fold(x, n, crease, *, batch_tile=None, vmem_limit_bytes=None):
    """x: (B, W), n: (W,), crease: scalar.  Matches SigmoidFold.forward."""
    B, W = x.shape
    out_dtype = x.dtype
    itemsize = jnp.dtype(x.dtype).itemsize
    sublane = max(8, 32 // itemsize)  # 8 rows for f32, 16 for bf16, ...

    # --- parameter prep (glue; mirrors the PyTorch zero-norm guard) -----------
    n = jnp.where(jnp.linalg.norm(n.astype(jnp.float32)) == 0, n + 1e-8, n)
    n_f32 = n.astype(jnp.float32)
    n_dot_n = jnp.dot(n_f32, n_f32)
    scalars = jnp.stack(
        [jnp.asarray(crease, jnp.float32), n_dot_n, 1.0 / n_dot_n]
    ).astype(jnp.float32)

    # --- lane padding: make W a multiple of 128 when the overhead is small ----
    W_pad = W
    if W % _LANE != 0:
        cand = _round_up(W, _LANE)
        if (cand - W) <= _MAX_LANE_PAD_FRAC * W:
            W_pad = cand
        # else: keep full-extent W block (legal; padding traffic would dominate)

    # --- batch tiling: ~4 MiB tiles, multiple of `sublane` rows ---------------
    # Double-buffered in + out tiles ~= 4x tile bytes -> well inside v7x's
    # 64 MiB physical / 32 MiB scoped VMEM, and big enough for ~roofline BW.
    if batch_tile is None:
        row_bytes = max(W_pad * itemsize, 1)
        batch_tile = max(sublane,
                         (_TARGET_TILE_BYTES // row_bytes) // sublane * sublane)
    batch_tile = int(_round_up(int(batch_tile), sublane))
    batch_tile = min(batch_tile, _round_up(B, sublane))

    B_pad = _round_up(B, batch_tile)

    x_in = x
    if (B_pad, W_pad) != (B, W):
        x_in = jnp.pad(x, ((0, B_pad - B), (0, W_pad - W)))
    n2d = n.reshape(1, W)
    if W_pad != W:
        n2d = jnp.pad(n2d, ((0, 0), (0, W_pad - W)))

    grid = (B_pad // batch_tile,)

    out = pl.pallas_call(
        sigmoid_fold_kernel,
        out_shape=jax.ShapeDtypeStruct((B_pad, W_pad), out_dtype),
        grid_spec=pltpu.PrefetchScalarGridSpec(
            num_scalar_prefetch=0,
            grid=grid,
            in_specs=[
                pl.BlockSpec(memory_space=pltpu.MemorySpace.SMEM),      # scalars
                pl.BlockSpec((batch_tile, W_pad), lambda i: (i, 0)),    # x tile
                pl.BlockSpec((1, W_pad), lambda i: (0, 0)),             # n (resident)
            ],
            out_specs=pl.BlockSpec((batch_tile, W_pad), lambda i: (i, 0)),
        ),
        compiler_params=pltpu.CompilerParams(
            dimension_semantics=("parallel",),   # lets v7x shard the grid over 2 TCs
            vmem_limit_bytes=vmem_limit_bytes,
        ),
    )(scalars, x_in, n2d)

    if (B_pad, W_pad) != (B, W):
        out = out[:B, :W]
    return out


def sigmoid_fold_ref(x, n, crease):
    """Pure-JAX reference mirroring the PyTorch forward."""
    n = jnp.where(jnp.linalg.norm(n) == 0, n + 1e-8, n)
    z_dot_x = jnp.sum(x * n[None, :], axis=-1)
    n_dot_n = jnp.dot(n, n)
    scales = z_dot_x / n_dot_n
    p = crease * (z_dot_x - n_dot_n)
    sigmoid = 1.0 / (1.0 + jnp.exp(-p))
    ortho_proj = (1.0 - scales)[:, None] * n
    return x + 2.0 * sigmoid[:, None] * ortho_proj


if __name__ == "__main__":
    key = jax.random.PRNGKey(0)
    k_x, k_n, k_c, k_x2, k_n2 = jax.random.split(key, 5)

    # Case 1: small shapes matching the module's (batch, width) contract.
    batch, width = 8, 32
    x = jax.random.normal(k_x, (batch, width), dtype=jnp.float32)
    # Deterministic parameter init matching the module's __init__ shapes.
    n = jax.random.normal(k_n, (width,), dtype=jnp.float32) * (2.0 / width) ** 0.5
    crease = jax.random.normal(k_c, (), dtype=jnp.float32) * 0.5 + 1.0  # "right mode"

    out = jax.block_until_ready(sigmoid_fold(x, n, crease))
    ref = sigmoid_fold_ref(x, n, crease)
    assert out.shape == (batch, width)
    assert jnp.allclose(out, ref, atol=1e-5, rtol=1e-5), "mismatch vs reference (case 1)"

    # Case 2: ragged shapes to exercise the batch/lane padding paths.
    b2, w2 = 10, 1000
    x2 = jax.random.normal(k_x2, (b2, w2), dtype=jnp.float32)
    n2 = jax.random.normal(k_n2, (w2,), dtype=jnp.float32) * (2.0 / w2) ** 0.5
    out2 = jax.block_until_ready(sigmoid_fold(x2, n2, crease))
    ref2 = sigmoid_fold_ref(x2, n2, crease)
    assert out2.shape == (b2, w2)
    assert jnp.allclose(out2, ref2, atol=1e-5, rtol=1e-5), "mismatch vs reference (case 2)"

    print("KERNEL_OK")
</pallas_src>

<mosaic_0001>
module attributes {stable_mosaic.version = 11 : i64} {
  func.func @sigmoid_fold_kernel(%arg0: i32, %arg1: memref<3xf32, #tpu.memory_space<smem>>, %arg2: memref<8x32xf32, #tpu.memory_space<vmem>>, %arg3: memref<1x32xf32, #tpu.memory_space<vmem>>, %arg4: memref<8x32xf32, #tpu.memory_space<vmem>>) attributes {dimension_semantics = [#tpu.dimension_semantics<parallel>], iteration_bounds = array<i64: 1>, scalar_prefetch = 0 : i64, scratch_operands = 0 : i64, tpu.core_type = #tpu.core_type<tc>, window_params = [{transform_indices = @transform_0, window_bounds = array<i64: 3>}, {transform_indices = @transform_1, window_bounds = array<i64: 8, 32>}, {pipeline_mode = #tpu.pipeline_mode<synchronous>, transform_indices = @transform_2, window_bounds = array<i64: 1, 32>}, {transform_indices = @transform_3, window_bounds = array<i64: 8, 32>}]} {
    %c0 = arith.constant 0 : index
    %c0_0 = arith.constant 0 : index
    %0 = vector.load %arg2[%c0, %c0_0] : memref<8x32xf32, #tpu.memory_space<vmem>>, vector<8x32xf32>
    %c0_1 = arith.constant 0 : index
    %c0_2 = arith.constant 0 : index
    %1 = vector.load %arg3[%c0_1, %c0_2] : memref<1x32xf32, #tpu.memory_space<vmem>>, vector<1x32xf32>
    %c0_3 = arith.constant 0 : index
    %2 = memref.load %arg1[%c0_3] : memref<3xf32, #tpu.memory_space<smem>>
    %c1 = arith.constant 1 : index
    %3 = memref.load %arg1[%c1] : memref<3xf32, #tpu.memory_space<smem>>
    %c2 = arith.constant 2 : index
    %4 = memref.load %arg1[%c2] : memref<3xf32, #tpu.memory_space<smem>>
    %5 = vector.broadcast %1 : vector<1x32xf32> to vector<8x32xf32>
    %6 = arith.mulf %0, %5 : vector<8x32xf32>
    %cst = arith.constant dense<0.000000e+00> : vector<8xf32>
    %7 = vector.multi_reduction <add>, %6, %cst [1] : vector<8x32xf32> to vector<8xf32>
    %8 = vector.shape_cast %7 : vector<8xf32> to vector<8x1xf32>
    %9 = vector.broadcast %4 : f32 to vector<8x1xf32>
    %10 = arith.mulf %8, %9 : vector<8x1xf32>
    %11 = vector.broadcast %3 : f32 to vector<8x1xf32>
    %12 = arith.subf %8, %11 : vector<8x1xf32>
    %13 = vector.broadcast %2 : f32 to vector<8x1xf32>
    %14 = arith.mulf %13, %12 : vector<8x1xf32>
    %15 = math.absf %14 : vector<8x1xf32>
    %cst_4 = arith.constant 0.000000e+00 : f32
    %16 = vector.broadcast %cst_4 : f32 to vector<8x1xf32>
    %17 = arith.subf %16, %15 : vector<8x1xf32>
    %18 = math.exp %17 : vector<8x1xf32>
    %cst_5 = arith.constant 0.000000e+00 : f32
    %19 = vector.broadcast %cst_5 : f32 to vector<8x1xf32>
    %20 = arith.cmpf oge, %14, %19 : vector<8x1xf32>
    %cst_6 = arith.constant 1.000000e+00 : f32
    %21 = vector.broadcast %cst_6 : f32 to vector<8x1xf32>
    %22 = arith.select %20, %21, %18 : vector<8x1xi1>, vector<8x1xf32>
    %cst_7 = arith.constant 1.000000e+00 : f32
    %23 = vector.broadcast %cst_7 : f32 to vector<8x1xf32>
    %24 = arith.addf %23, %18 : vector<8x1xf32>
    %25 = arith.divf %22, %24 : vector<8x1xf32>
    %cst_8 = arith.constant 2.000000e+00 : f32
    %26 = vector.broadcast %cst_8 : f32 to vector<8x1xf32>
    %27 = arith.mulf %26, %25 : vector<8x1xf32>
    %cst_9 = arith.constant 1.000000e+00 : f32
    %28 = vector.broadcast %cst_9 : f32 to vector<8x1xf32>
    %29 = arith.subf %28, %10 : vector<8x1xf32>
    %30 = arith.mulf %27, %29 : vector<8x1xf32>
    %31 = vector.broadcast %30 : vector<8x1xf32> to vector<8x32xf32>
    %32 = vector.broadcast %1 : vector<1x32xf32> to vector<8x32xf32>
    %33 = arith.mulf %31, %32 : vector<8x32xf32>
    %34 = arith.addf %0, %33 : vector<8x32xf32>
    %c0_10 = arith.constant 0 : index
    %c0_11 = arith.constant 0 : index
    %35 = vector.load %arg4[%c0_10, %c0_11] : memref<8x32xf32, #tpu.memory_space<vmem>>, vector<8x32xf32>
    tpu.vector_store %arg4[%c0_10, %c0_11], %34 {strides = array<i32>} : memref<8x32xf32, #tpu.memory_space<vmem>>, vector<8x32xf32>,
    return
  }
  func.func @transform_0(%arg0: i32) -> i32 {
    %c0_i32 = arith.constant 0 : i32
    %c0_i32_0 = arith.constant 0 : i32
    return %c0_i32 : i32
  }
  func.func @transform_1(%arg0: i32) -> (i32, i32) {
    %c0_i32 = arith.constant 0 : i32
    %c0_i32_0 = arith.constant 0 : i32
    return %arg0, %c0_i32 : i32, i32
  }
  func.func @transform_2(%arg0: i32) -> (i32, i32) {
    %c0_i32 = arith.constant 0 : i32
    %c0_i32_0 = arith.constant 0 : i32
    %c0_i32_1 = arith.constant 0 : i32
    return %c0_i32, %c0_i32_0 : i32, i32
  }
  func.func @transform_3(%arg0: i32) -> (i32, i32) {
    %c0_i32 = arith.constant 0 : i32
    %c0_i32_0 = arith.constant 0 : i32
    return %arg0, %c0_i32 : i32, i32
  }
}

</mosaic_0001>

<bundles_post_ra>
// kernel: tpu_custom_call.1
= control target key start
LH: loop header
LB: loop body
LE: loop exit
PB: predicated region body
PF: predicated region fallthrough
CT: control target
= control target key end

     0   :  { %8 = vsyncpa [#allocation5], 0  ;;  %s225_s0 = inlined_call_operand.hbm [shape: f32[3], index: 0, kind: input, shape index: {}]   ;;  %s226_s1 = inlined_call_operand.hbm [shape: f32[8,32], index: 1, kind: input, shape index: {}]   ;;  %s227_s2 = inlined_call_operand.vmem [shape: f32[1,32], index: 2, kind: input, shape index: {}]   ;;  %s228_s3 = inlined_call_operand.hbm [shape: f32[8,32], index: 3, kind: output, shape index: {}]  }
   0x1   :  { %9 = vsyncpa [#allocation3], 0 }
   0x2   :  { %10 = vsyncpa [#allocation4], 0  ;;  %s101_s14 = scalar_lea.hbm %s225_s0, 16 }
   0x3   :  { %p102_p0 = scmp.ne.s32.totalorder %s225_s0, %s101_s14  ;;  %p105_p1 = scmp.lt.u32.totalorder %s101_s14, %s225_s0 }
   0x5   :  { %p107_p2 = pnand %p105_p1, %p102_p0 }
   0x7   :  { %110 = shalt.err (!%p107_p2)
}
   0x8   :  { %s161_s19 = smov [#allocation2]   ;;  %s162_s22 = smov [#allocation6]  }
   0x9   :  { %18 = dma.hbm_to_smem %s225_s0, 16, %s161_s19, [#allocation5]  }
   0xa   :  { %s25_s23 = sshll.u32 %s162_s22, 4  ;;  %s111_s26 = scalar_lea.hbm %s226_s1, 128  ;;  %s26_s23 = int_to_ptr.vmem [resolvable:$true] %s25_s23 }
   0xb   :  { %p112_p3 = scmp.ne.s32.totalorder %s226_s1, %s111_s26  ;;  %p115_p4 = scmp.lt.u32.totalorder %s111_s26, %s226_s1 }
   0xd   :  { %p117_p5 = pnand %p115_p4, %p112_p3 }
   0xf   :  { %120 = shalt.err (!%p117_p5)
}
  0x10   :  { %s121_s4 = scalar_lea.vmem %s26_s23, 128  ;;  %p126_p7 = scmp.lt.s32.totalorder %s26_s23, %s26_s23 }
  0x11   :  { %p122_p6 = scmp.ne.s32.totalorder %s26_s23, %s121_s4  ;;  %p127_p8 = scmp.lt.s32.totalorder %s121_s4, %s121_s4 }
  0x13   :  { %p128_p9 = por %p127_p8, %p126_p7 }
  0x15   :  { %p129_p10 = pnand %p128_p9, %p122_p6 }
  0x17   :  { %132 = shalt.err (!%p129_p10)
}
  0x18   :  { %28 = dma.hbm_to_vmem [thread:$0]  %s226_s1, 128, %s26_s23, [#allocation3]  }
  0x19   :  { %155 = dma.done.wait [#allocation5], 16  }
  0x1a   :  { %156 = vsyncadd [#allocation5], 4294967280 }
  0x1b   :  { %157 = dma.done.wait [#allocation3], 128  }
  0x1c   :  { %158 = vsyncadd [#allocation3], 4294967168 }
  0x1d   :  { %37 = sfence }
  0x1e   :  { %v38_v0 = vld [vmem:[#allocation6] sm:$0xff]  ;;  %vm50_vm0 = vcmask 261120   ;;  %s91_s8 = sld [smem:[#allocation2 + $0x1]]  ;;  %s40_s9 = sld [smem:[#allocation2]] }
  0x1f   :  { %v93_v1 = vld [vmem:[%s227_s2] ss:$0 sm:$0xff]  ;;  %s92_s1 = sld [smem:[#allocation2 + $0x2]]  ;;  %s163_s2 = smov [#allocation7]  }
  0x20   :  { %v49_v2 = vmul.f32 %v93_v1, %v38_v0  ;;  %s81_s10 = sshll.u32 %s163_s2, 4  ;;  %s82_s10 = int_to_ptr.vmem [resolvable:$true] %s81_s10 }
  0x21   :  { %s133_s11 = scalar_lea.vmem %s82_s10, 128  ;;  %p138_p12 = scmp.lt.s32.totalorder %s82_s10, %s82_s10 }
  0x22   :  { %v51_v3 = vsel %vm50_vm0, %v49_v2, 0.0  ;;  %p134_p11 = scmp.ne.s32.totalorder %s82_s10, %s133_s11  ;;  %p139_p13 = scmp.lt.s32.totalorder %s133_s11, %s133_s11 }
  0x23   :  { %52 = vadd.xlane.f32.xlu0 %v51_v3 }
  0x24   :  { %v56_v4 = vstv %s91_s8  ;;  %v58_v6 = vstv %s40_s9  ;;  %p140_p0 = por %p139_p13, %p138_p12 }
  0x25   :  { %v54_v14 = vstv %s92_s1 }
  0x26   :  { %p141_p1 = pnand %p140_p0, %p134_p11 }
  0xb0   :  { %v53_v5 = vpop.xlane.xlu0 %52 }
  0xb1   :  { %v57_v7 = vsub.f32 %v53_v5, %v56_v4  ;;  %v55_v15 = vmul.f32 %v54_v14, %v53_v5 }
  0xb3   :  { %v59_v8 = vmul.f32 %v58_v6, %v57_v7  ;;  %v70_v20 = vsub.f32 1.0, %v55_v15 }
  0xb5   :  { %v60_v9 = vand.u32 2147483647, %v59_v8  ;;  %vm64_vm1 = vcmp.ge.f32.partialorder %v59_v8, 0.0 }
  0xb7   :  { %v61_v10 = vsub.f32 0.0, %v60_v9 }
  0xb9   :  { %v62_v11 = vmul.f32 1.442695, %v61_v10 }
  0xbb   :  { %97 = vpow2.f32 %v62_v11 }
  0xc5   :  { %v98_v12 = vpop.eup %97 }
  0xc6   :  { %v66_v13 = vadd.f32 1.0, %v98_v12  ;;  %v65_v17 = vsel %vm64_vm1, 1.0, %v98_v12 }
  0xc8   :  { %99 = vrcp.f32 %v66_v13 }
  0xd2   :  { %v100_v16 = vpop.eup %99 }
  0xd3   :  { %v68_v18 = vmul.f32 %v100_v16, %v65_v17 }
  0xd5   :  { %v69_v19 = vmul.f32 2.0, %v68_v18 }
  0xd7   :  { %v71_v21 = vmul.f32 %v70_v20, %v69_v19 }
  0xd9   :  { %v72_v22 = vmul.f32 %v93_v1, %v71_v21 }
  0xdb   :  { %v73_v23 = vadd.f32 %v72_v22, %v38_v0 }
  0xdd   :  { %74 = vst.msk [vmem:[#allocation7] sm:$0xff] %vm50_vm0, %v73_v23 }
  0xde   :  { %144 = shalt.err (!%p141_p1)
}
  0xdf   :  { %s145_s14 = scalar_lea.hbm %s228_s3, 128 }
  0xe0   :  { %p146_p2 = scmp.ne.s32.totalorder %s228_s3, %s145_s14  ;;  %p149_p3 = scmp.lt.u32.totalorder %s145_s14, %s228_s3 }
  0xe2   :  { %p151_p4 = pnand %p149_p3, %p146_p2 }
  0xe4   :  { %154 = shalt.err (!%p151_p4)
}
  0xe5   :  { %84 = dma.vmem_to_hbm [thread:$0]  %s82_s10, 128, %s228_s3, [#allocation4]  }
  0xe6   :  { %159 = dma.done.wait [#allocation4], 128  }
  0xe7   :  { %160 = vsyncadd [#allocation4], 4294967168 }
  0xe8   :  { %88 = vsyncpa [#allocation3], 1 }
  0xe9   :  { %89 = vsyncpa [#allocation4], 1 }
  0xea   :  { %90 = vsyncpa [#allocation5], 1 }

</bundles_post_ra>
